<compile_context>
chip_gen: v7x
topology: tpu7x:2x2x1
jax: 0.10.0
libtpu: 0.0.40
codegen_flags: <defaults>
</compile_context>

<pallas_src>
import numpy as np
import jax
import jax.numpy as jnp
from jax.experimental import pallas as pl
from jax.experimental.pallas import tpu as pltpu

SQRT2 = np.float32(np.sqrt(2.0))

_LANE = 128   # lane width: channel axis padded to a multiple of this
_SUB = 16     # sublane alignment that covers both f32 (8) and bf16 (16) packing


def _round_up(n, m):
    return ((n + m - 1) // m) * m


def mp_fourier_kernel(x_ref, freqs_ref, phases_ref, o_ref):
    # x_ref:      (TB, 1)      input dtype (cast to f32 in-kernel)
    # freqs_ref:  (1,  C_pad)  float32
    # phases_ref: (1,  C_pad)  float32
    # o_ref:      (TB, C_pad)  output dtype (== input dtype)
    x = x_ref[...].astype(jnp.float32)         # VPU cast, co-issues under cos
    f = freqs_ref[...]
    p = phases_ref[...]
    y = x * f + p                              # broadcast outer product + phase
    o_ref[...] = (jnp.cos(y) * SQRT2).astype(o_ref.dtype)


def mp_fourier(x, freqs, phases, *, tb_target=1024):
    """x: (B,) any float dtype; freqs, phases: (C,) float32. Returns (B, C) in x.dtype."""
    B = x.shape[0]
    C = freqs.shape[0]
    out_dtype = x.dtype

    # Lane-dense channel axis.
    C_pad = max(_LANE, _round_up(C, _LANE))

    # Batch tile: sublane-aligned, capped so the f32 working tile is ~2 MiB
    # (double-buffered output stays far below the 32 MiB scoped / 64 MiB
    # physical VMEM limits on v7x while staying near HBM roofline).
    B_rounded = _round_up(B, _SUB)
    bytes_per_row = C_pad * 4
    max_rows = max(_SUB, ((2 * 1024 * 1024) // bytes_per_row) // _SUB * _SUB)
    TB = min(_round_up(tb_target, _SUB), B_rounded, max_rows)
    num_tiles = pl.cdiv(B_rounded, TB)
    B_pad = num_tiles * TB

    # Pad inputs (x stays in its original dtype; cast happens inside the kernel).
    x2 = x.reshape(B, 1)
    if B_pad != B:
        x2 = jnp.pad(x2, ((0, B_pad - B), (0, 0)))
    f2 = freqs.astype(jnp.float32).reshape(1, C)
    p2 = phases.astype(jnp.float32).reshape(1, C)
    if C_pad != C:
        f2 = jnp.pad(f2, ((0, 0), (0, C_pad - C)))
        p2 = jnp.pad(p2, ((0, 0), (0, C_pad - C)))

    out_itemsize = jnp.dtype(out_dtype).itemsize
    cost = pl.CostEstimate(
        flops=2 * B_pad * C_pad,
        transcendentals=B_pad * C_pad,
        bytes_accessed=B_pad * C_pad * out_itemsize
        + B_pad * jnp.dtype(x.dtype).itemsize
        + 2 * C_pad * 4,
    )

    out = pl.pallas_call(
        mp_fourier_kernel,
        out_shape=jax.ShapeDtypeStruct((B_pad, C_pad), out_dtype),
        grid_spec=pltpu.PrefetchScalarGridSpec(
            num_scalar_prefetch=0,
            grid=(num_tiles,),
            in_specs=[
                pl.BlockSpec((TB, 1), lambda i: (i, 0)),
                pl.BlockSpec((1, C_pad), lambda i: (0, 0)),
                pl.BlockSpec((1, C_pad), lambda i: (0, 0)),
            ],
            out_specs=pl.BlockSpec((TB, C_pad), lambda i: (i, 0)),
        ),
        compiler_params=pltpu.CompilerParams(
            dimension_semantics=("parallel",),
        ),
        cost_estimate=cost,
    )(x2, f2, p2)

    if B_pad != B or C_pad != C:
        out = out[:B, :C]
    return out


def reference(x, freqs, phases):
    y = x.astype(jnp.float32)[:, None] * freqs[None, :].astype(jnp.float32)
    y = y + phases[None, :].astype(jnp.float32)
    y = jnp.cos(y) * SQRT2
    return y.astype(x.dtype)


if __name__ == "__main__":
    num_channels = 32
    bandwidth = 1.0
    batch = 8

    key = jax.random.PRNGKey(0)
    k_f, k_p, k_x = jax.random.split(key, 3)

    # Deterministic "buffers" matching the PyTorch __init__ shapes/distributions.
    freqs = (2.0 * np.pi) * jax.random.normal(k_f, (num_channels,), dtype=jnp.float32) * bandwidth
    phases = (2.0 * np.pi) * jax.random.uniform(k_p, (num_channels,), dtype=jnp.float32)

    # Input: 1-D vector (e.g. per-sample noise levels / timesteps).
    x = jax.random.normal(k_x, (batch,), dtype=jnp.float32)

    out = mp_fourier(x, freqs, phases)
    out = jax.block_until_ready(out)

    ref = reference(x, freqs, phases)
    assert out.shape == (batch, num_channels)
    assert out.dtype == x.dtype
    np.testing.assert_allclose(np.asarray(out), np.asarray(ref), rtol=1e-5, atol=1e-5)

    print("KERNEL_OK")
</pallas_src>

<mosaic_0001>
module attributes {stable_mosaic.version = 11 : i64} {
  func.func @mp_fourier_kernel(%arg0: i32, %arg1: memref<16x1xf32, #tpu.memory_space<vmem>>, %arg2: memref<1x128xf32, #tpu.memory_space<vmem>>, %arg3: memref<1x128xf32, #tpu.memory_space<vmem>>, %arg4: memref<16x128xf32, #tpu.memory_space<vmem>>) attributes {dimension_semantics = [#tpu.dimension_semantics<parallel>], iteration_bounds = array<i64: 1>, scalar_prefetch = 0 : i64, scratch_operands = 0 : i64, tpu.core_type = #tpu.core_type<tc>, window_params = [{transform_indices = @transform_0, window_bounds = array<i64: 16, 1>}, {pipeline_mode = #tpu.pipeline_mode<synchronous>, transform_indices = @transform_1, window_bounds = array<i64: 1, 128>}, {pipeline_mode = #tpu.pipeline_mode<synchronous>, transform_indices = @transform_2, window_bounds = array<i64: 1, 128>}, {transform_indices = @transform_3, window_bounds = array<i64: 16, 128>}]} {
    %c0 = arith.constant 0 : index
    %c0_0 = arith.constant 0 : index
    %0 = vector.load %arg1[%c0, %c0_0] : memref<16x1xf32, #tpu.memory_space<vmem>>, vector<16x1xf32>
    %c0_1 = arith.constant 0 : index
    %c0_2 = arith.constant 0 : index
    %1 = vector.load %arg2[%c0_1, %c0_2] : memref<1x128xf32, #tpu.memory_space<vmem>>, vector<1x128xf32>
    %c0_3 = arith.constant 0 : index
    %c0_4 = arith.constant 0 : index
    %2 = vector.load %arg3[%c0_3, %c0_4] : memref<1x128xf32, #tpu.memory_space<vmem>>, vector<1x128xf32>
    %3 = vector.broadcast %0 : vector<16x1xf32> to vector<16x128xf32>
    %4 = vector.broadcast %1 : vector<1x128xf32> to vector<16x128xf32>
    %5 = arith.mulf %3, %4 : vector<16x128xf32>
    %6 = vector.broadcast %2 : vector<1x128xf32> to vector<16x128xf32>
    %7 = arith.addf %5, %6 : vector<16x128xf32>
    %8 = math.cos %7 : vector<16x128xf32>
    %cst = arith.constant 1.41421354 : f32
    %9 = vector.broadcast %cst : f32 to vector<16x128xf32>
    %10 = arith.mulf %8, %9 : vector<16x128xf32>
    %c0_5 = arith.constant 0 : index
    %c0_6 = arith.constant 0 : index
    %11 = vector.load %arg4[%c0_5, %c0_6] : memref<16x128xf32, #tpu.memory_space<vmem>>, vector<16x128xf32>
    tpu.vector_store %arg4[%c0_5, %c0_6], %10 {strides = array<i32>} : memref<16x128xf32, #tpu.memory_space<vmem>>, vector<16x128xf32>,
    return
  }
  func.func @transform_0(%arg0: i32) -> (i32, i32) {
    %c0_i32 = arith.constant 0 : i32
    %c0_i32_0 = arith.constant 0 : i32
    return %arg0, %c0_i32 : i32, i32
  }
  func.func @transform_1(%arg0: i32) -> (i32, i32) {
    %c0_i32 = arith.constant 0 : i32
    %c0_i32_0 = arith.constant 0 : i32
    %c0_i32_1 = arith.constant 0 : i32
    return %c0_i32, %c0_i32_0 : i32, i32
  }
  func.func @transform_2(%arg0: i32) -> (i32, i32) {
    %c0_i32 = arith.constant 0 : i32
    %c0_i32_0 = arith.constant 0 : i32
    %c0_i32_1 = arith.constant 0 : i32
    return %c0_i32, %c0_i32_0 : i32, i32
  }
  func.func @transform_3(%arg0: i32) -> (i32, i32) {
    %c0_i32 = arith.constant 0 : i32
    %c0_i32_0 = arith.constant 0 : i32
    return %arg0, %c0_i32 : i32, i32
  }
}

</mosaic_0001>

<bundles_post_ra>
// kernel: tpu_custom_call.1
= control target key start
LH: loop header
LB: loop body
LE: loop exit
PB: predicated region body
PF: predicated region fallthrough
CT: control target
= control target key end

     0   :  { %v332_v1 = vmov 0   ;;  %s462_s0 = inlined_call_operand.vmem [shape: f32[16,1], index: 0, kind: input, shape index: {}]   ;;  %s463_s1 = inlined_call_operand.vmem [shape: f32[1,128], index: 1, kind: input, shape index: {}]   ;;  %s464_s2 = inlined_call_operand.vmem [shape: f32[1,128], index: 2, kind: input, shape index: {}]   ;;  %s465_s3 = inlined_call_operand.hbm [shape: f32[16,128], index: 3, kind: output, shape index: {}]  }
   0x1   :  { %v15_v0 = vld [vmem:[%s462_s0] sm:$0xff]  ;;  %299 = vset.pattern.permute.xlu0 %v332_v1  ;;  %v16_v2 = vld [vmem:[%s462_s0 + $0x8] sm:$0xff] }
   0x2   :  { %21 = vperm.xlu0 %299, %v15_v0  }
   0x3   :  { %8 = vsyncpa [#allocation3], 0  ;;  %v271_v3 = vld [vmem:[%s463_s1] ss:$0 sm:$0xff]  ;;  %v333_v27 = vmov 683565275  }
   0x4   :  { %v272_v4 = vld [vmem:[%s464_s2] ss:$0 sm:$0xff]  ;;  %v334_v31 = vmov 2475754826   ;;  %v335_v33 = vmov 2131351028  }
   0x5   :  { %v336_v35 = vmov 2102212464   ;;  %v337_v37 = vmov 920167782   ;;  %v338_v44 = vmov 1326507024  }
   0x6   :  { %26 = vperm.xlu0 %299, %v16_v2   ;;  %s339_s0 = smov [#allocation2]  }
   0x7   :  { %s260_s1 = sshll.u32 %s339_s0, 4  ;;  %s261_s1 = int_to_ptr.vmem [resolvable:$true] %s260_s1 }
   0x8   :  { %s308_s2 = scalar_lea.vmem %s261_s1, 256  ;;  %p313_p1 = scmp.lt.s32.totalorder %s261_s1, %s261_s1 }
   0x9   :  { %p309_p0 = scmp.ne.s32.totalorder %s261_s1, %s308_s2  ;;  %p314_p2 = scmp.lt.s32.totalorder %s308_s2, %s308_s2 }
   0xb   :  { %p315_p3 = por %p314_p2, %p313_p1 }
   0xd   :  { %p316_p4 = pnand %p315_p3, %p309_p0 }
  0x81   :  { %v22_v5 = vpop.permute.xlu0 %21 }
  0x82   :  { %v35_v6 = vmul.f32 %v271_v3, %v22_v5 }
  0x84   :  { %v374_v7 = vadd.f32 %v272_v4, %v35_v6 }
  0x85   :  { %v27_v8 = vpop.permute.xlu0 %26 }
  0x86   :  { %v45_v9 = vand.u32 2147483647, %v374_v7  ;;  %v48_v10 = vand.u32 2139095040, %v374_v7  ;;  %v36_v11 = vmul.f32 %v271_v3, %v27_v8  ;;  %vm47_vm14 = vcmp.lt.s32.totalorder %v374_v7, 0 }
  0x88   :  { %v49_v12 = vshrl.u32 %v48_v10, 23  ;;  %v378_v13 = vadd.f32 %v272_v4, %v36_v11  ;;  %v52_v14 = vand.u32 8388607, %v45_v9  ;;  %vm427_vm15 = vcmp.le.f32.partialorder %v45_v9, 0.7853982 }
  0x8a   :  { %v273_v15 = vadd.s32 4294967169, %v49_v12  ;;  %v151_v16 = vand.u32 2139095040, %v378_v13  ;;  %v53_v18 = vor.u32 8388608, %v52_v14  ;;  %v148_v20 = vand.u32 2147483647, %v378_v13 }
  0x8c   :  { %v55_v17 = vadd.s32 1, %v273_v15  ;;  %v152_v19 = vshrl.u32 %v151_v16, 23  ;;  %v384_v25 = vshll.u32 %v53_v18, 8  ;;  %v155_v29 = vand.u32 8388607, %v148_v20 }
  0x8e   :  { %vm56_vm0 = vcmp.gt.s32.totalorder %v55_v17, 0  ;;  %v277_v22 = vadd.s32 4294967169, %v152_v19  ;;  %v156_v59 = vor.u32 8388608, %v155_v29 }
  0x8f   :  { %v57_v21 = vsel %vm56_vm0, %v55_v17, 0  ;;  %vm150_vm0 = vcmp.lt.s32.totalorder %v378_v13, 0 }
  0x90   :  { %v58_v23 = vshrl.u32 %v57_v21, 5  ;;  %v59_v24 = vand.u32 31, %v57_v21  ;;  %v158_v30 = vadd.s32 1, %v277_v22  ;;  %v196_v10 = vshll.u32 %v156_v59, 8 }
  0x92   :  { %v60_v26 = vsub.s32 32, %v59_v24  ;;  %v62_v28 = vshll.u32 %v333_v27, %v59_v24  ;;  %v65_v32 = vshll.u32 %v334_v31, %v59_v24  ;;  %v68_v34 = vshll.u32 %v335_v33, %v59_v24 }
  0x93   :  { %v71_v36 = vshll.u32 %v336_v35, %v59_v24  ;;  %v74_v38 = vshll.u32 %v337_v37, %v59_v24  ;;  %vm77_vm1 = vcmp.lt.s32.totalorder %v58_v23, 1  ;;  %vm79_vm2 = vcmp.lt.s32.totalorder %v58_v23, 3 }
  0x94   :  { %v63_v39 = vshrl.u32 %v334_v31, %v60_v26  ;;  %v66_v40 = vshrl.u32 %v335_v33, %v60_v26  ;;  %v69_v41 = vshrl.u32 %v336_v35, %v60_v26  ;;  %v61_v42 = vshrl.u32 %v333_v27, %v60_v26 }
  0x95   :  { %v72_v43 = vshrl.u32 %v337_v37, %v60_v26  ;;  %v75_v45 = vshrl.u32 %v338_v44, %v60_v26  ;;  %vm159_vm3 = vcmp.gt.s32.totalorder %v158_v30, 0  ;;  %vm80_vm4 = vcmp.lt.s32.totalorder %v58_v23, 4 }
  0x96   :  { %v64_v46 = vor.u32 %v63_v39, %v62_v28  ;;  %v67_v47 = vor.u32 %v66_v40, %v65_v32  ;;  %v70_v48 = vor.u32 %v69_v41, %v68_v34  ;;  %v160_v51 = vsel %vm159_vm3, %v158_v30, 0 }
  0x97   :  { %v73_v49 = vor.u32 %v72_v43, %v71_v36  ;;  %v76_v50 = vor.u32 %v75_v45, %v74_v38  ;;  %vm78_vm5 = vcmp.lt.s32.totalorder %v58_v23, 2  ;;  %v162_v62 = vand.u32 31, %v160_v51 }
  0x98   :  { %v81_v52 = vsel %vm77_vm1, %v61_v42, %v64_v46  ;;  %v82_v53 = vsel %vm80_vm4, %v70_v48, 2102212464  ;;  %v85_v54 = vsel %vm77_vm1, %v64_v46, %v67_v47  ;;  %v89_v55 = vsel %vm77_vm1, %v67_v47, %v70_v48 }
  0x99   :  { %v83_v56 = vsel %vm79_vm2, %v67_v47, %v82_v53  ;;  %v86_v57 = vsel %vm80_vm4, %v73_v49, 920167782  ;;  %v90_v58 = vsel %vm80_vm4, %v76_v50, 1326507024  ;;  %v161_v6 = vshrl.u32 %v160_v51, 5 }
  0x9a   :  { %v87_v60 = vsel %vm79_vm2, %v70_v48, %v86_v57  ;;  %v91_v61 = vsel %vm79_vm2, %v73_v49, %v90_v58  ;;  %v84_v63 = vsel %vm78_vm5, %v81_v52, %v83_v56  ;;  %v163_v8 = vsub.s32 32, %v162_v62 }
  0x9b   :  { %v88_v0 = vsel %vm78_vm5, %v85_v54, %v87_v60  ;;  %v92_v1 = vsel %vm78_vm5, %v89_v55, %v91_v61  ;;  %v100_v11 = vmul.u32 %v384_v25, %v84_v63  ;;  %v165_v12 = vshll.u32 %v333_v27, %v162_v62 }
  0x9c   :  { %v397_v2 = vmul.u32.u64.low %v384_v25, %v92_v1  ;;  %v398_v3 = vmul.u32.u64.high %v384_v25, %v92_v1, %v397_v2  ;;  %v401_v4 = vmul.u32.u64.low %v384_v25, %v88_v0  ;;  %v402_v5 = vmul.u32.u64.high %v384_v25, %v88_v0, %v401_v4 }
  0x9d   :  { %v168_v14 = vshll.u32 %v334_v31, %v162_v62  ;;  %v171_v15 = vshll.u32 %v335_v33, %v162_v62  ;;  %v166_v16 = vshrl.u32 %v334_v31, %v163_v8  ;;  %v169_v17 = vshrl.u32 %v335_v33, %v163_v8 }
  0x9e   :  { %v172_v18 = vshrl.u32 %v336_v35, %v163_v8  ;;  %v174_v19 = vshll.u32 %v336_v35, %v162_v62  ;;  %vm102_vm6 = vc.u32 %v398_v3, %v401_v4  ;;  %v103_v21 = vadd.s32 1, %v402_v5 }
  0x9f   :  { %v175_v22 = vshrl.u32 %v337_v37, %v163_v8  ;;  %v177_v23 = vshll.u32 %v337_v37, %v162_v62  ;;  %v167_v24 = vor.u32 %v166_v16, %v165_v12  ;;  %v170_v26 = vor.u32 %v169_v17, %v168_v14 }
  0xa0   :  { %v173_v28 = vor.u32 %v172_v18, %v171_v15  ;;  %v178_v29 = vshrl.u32 %v338_v44, %v163_v8  ;;  %v104_v25 = vsel %vm102_vm6, %v103_v21, %v402_v5  ;;  %vm180_vm7 = vcmp.lt.s32.totalorder %v161_v6, 1 }
  0xa1   :  { %v176_v30 = vor.u32 %v175_v22, %v174_v19  ;;  %vm183_vm8 = vcmp.lt.s32.totalorder %v161_v6, 4  ;;  %v105_v31 = vadd.s32 %v104_v25, %v100_v11  ;;  %vm182_vm9 = vcmp.lt.s32.totalorder %v161_v6, 3 }
  0xa2   :  { %v179_v32 = vor.u32 %v178_v29, %v177_v23  ;;  %v185_v33 = vsel %vm183_vm8, %v173_v28, 2102212464  ;;  %v164_v34 = vshrl.u32 %v333_v27, %v163_v8  ;;  %v188_v35 = vsel %vm180_vm7, %v167_v24, %v170_v26 }
  0xa3   :  { %v189_v36 = vsel %vm183_vm8, %v176_v30, 920167782  ;;  %v192_v38 = vsel %vm180_vm7, %v170_v26, %v173_v28  ;;  %v106_v39 = vadd.s32 536870912, %v105_v31  ;;  %vm181_vm10 = vcmp.lt.s32.totalorder %v161_v6, 2 }
  0xa4   :  { %v190_v37 = vsel %vm182_vm9, %v173_v28, %v189_v36  ;;  %v193_v40 = vsel %vm183_vm8, %v179_v32, 1326507024  ;;  %v184_v41 = vsel %vm180_vm7, %v164_v34, %v167_v24  ;;  %v186_v42 = vsel %vm182_vm9, %v170_v26, %v185_v33 }
  0xa5   :  { %v191_v43 = vsel %vm181_vm10, %v188_v35, %v190_v37  ;;  %v194_v44 = vsel %vm182_vm9, %v176_v30, %v193_v40  ;;  %v107_v45 = vshrl.u32 %v106_v39, 30  ;;  %v187_v51 = vsel %vm181_vm10, %v184_v41, %v186_v42 }
  0xa6   :  { %v195_v46 = vsel %vm181_vm10, %v192_v38, %v194_v44  ;;  %v412_v47 = vmul.u32.u64.low %v196_v10, %v191_v43  ;;  %v413_v48 = vmul.u32.u64.high %v196_v10, %v191_v43, %v412_v47  ;;  %v203_v54 = vmul.u32 %v196_v10, %v187_v51 }
  0xa7   :  { %v415_v49 = vmul.u32.u64.low %v196_v10, %v195_v46  ;;  %v416_v50 = vmul.u32.u64.high %v196_v10, %v195_v46, %v415_v49  ;;  %v108_v27 = vshll.u32 %v107_v45, 30  ;;  %v101_v2 = vadd.s32 %v401_v4, %v398_v3 }
  0xa8   :  { %v206_v53 = vadd.s32 1, %v413_v48  ;;  %v131_v33 = vsub.s32 4, %v107_v45  ;;  %vm439_vm1 = vcmp.le.f32.partialorder %v148_v20, 0.7853982  ;;  %vm137_vm5 = vweird.f32 %v374_v7 }
  0xa9   :  { %v109_v52 = vsub.s32 %v105_v31, %v108_v27  ;;  %vm205_vm11 = vc.u32 %v416_v50, %v412_v47  ;;  %v204_v26 = vadd.s32 %v412_v47, %v416_v50  ;;  %vm240_vm9 = vweird.f32 %v378_v13 }
  0xaa   :  { %v207_v56 = vsel %vm205_vm11, %v206_v53, %v413_v48  ;;  %v132_v39 = vsel %vm47_vm14, %v131_v33, %v107_v45 }
  0xab   :  { %v111_v55 = vsub.s32 0, %v109_v52  ;;  %v208_v57 = vadd.s32 %v207_v56, %v203_v54  ;;  %v134_v9 = vsel %vm427_vm15, 0, %v132_v39 }
  0xac   :  { %v138_v43 = vand.u32 3, %v134_v9 }
  0xad   :  { %v274_v58 = vmin.u32 %v111_v55, %v109_v52  ;;  %v209_v59 = vadd.s32 536870912, %v208_v57 }
  0xae   :  { %vm143_vm2 = vcmp.eq.s32.totalorder %v138_v43, 2  ;;  %vm140_vm3 = vcmp.eq.s32.totalorder %v138_v43, 0  ;;  %vm139_vm4 = vcmp.lt.s32.totalorder %v138_v43, 2 }
  0xaf   :  { %v113_v60 = vclz %v274_v58  ;;  %v210_v61 = vshrl.u32 %v209_v59, 30 }
  0xb1   :  { %v275_v62 = vadd.s32 4294967294, %v113_v60  ;;  %v211_v63 = vshll.u32 %v210_v61, 30  ;;  %v234_v47 = vsub.s32 4, %v210_v61 }
  0xb3   :  { %vm276_vm12 = vcmp.lt.s32.totalorder %v275_v62, 0  ;;  %v212_v1 = vsub.s32 %v208_v57, %v211_v63  ;;  %v235_v51 = vsel %vm150_vm0, %v234_v47, %v210_v61 }
  0xb4   :  { %v116_v0 = vsel %vm276_vm12, 0, %v275_v62  ;;  %v237_v55 = vsel %vm439_vm1, 0, %v235_v51 }
  0xb5   :  { %v117_v5 = vsub.s32 32, %v116_v0  ;;  %v121_v6 = vsub.s32 4294967266, %v116_v0  ;;  %v214_v8 = vsub.s32 0, %v212_v1  ;;  %v118_v10 = vshll.u32 %v109_v52, %v116_v0 }
  0xb6   :  { %v241_v57 = vand.u32 3, %v237_v55 }
  0xb7   :  { %v119_v11 = vshrl.u32 %v101_v2, %v117_v5  ;;  %v122_v12 = vadd.s32 127, %v121_v6  ;;  %v278_v14 = vmin.u32 %v214_v8, %v212_v1 }
  0xb8   :  { %vm246_vm6 = vcmp.eq.s32.totalorder %v241_v57, 2  ;;  %vm243_vm7 = vcmp.eq.s32.totalorder %v241_v57, 0  ;;  %vm242_vm8 = vcmp.lt.s32.totalorder %v241_v57, 2 }
  0xb9   :  { %v120_v15 = vor.u32 %v119_v11, %v118_v10  ;;  %v123_v16 = vshll.u32 %v122_v12, 23  ;;  %v216_v17 = vclz %v278_v14 }
  0xbb   :  { %v124_v18 = vor.u32 4788187, %v123_v16  ;;  %v279_v19 = vadd.s32 4294967294, %v216_v17  ;;  %v127_v22 = vcvt.s32.f32 %v120_v15 }
  0xbd   :  { %v125_v21 = vand.u32 2147483647, %v124_v18  ;;  %vm280_vm13 = vcmp.lt.s32.totalorder %v279_v19, 0 }
  0xbe   :  { %v219_v24 = vsel %vm280_vm13, 0, %v279_v19 }
  0xbf   :  { %v128_v23 = vmul.f32 %v127_v22, %v125_v21  ;;  %v220_v3 = vsub.s32 32, %v219_v24  ;;  %v224_v4 = vsub.s32 4294967266, %v219_v24  ;;  %v221_v29 = vshll.u32 %v212_v1, %v219_v24 }
  0xc1   :  { %v129_v28 = vxor.u32 2147483648, %v128_v23  ;;  %v222_v25 = vshrl.u32 %v204_v26, %v220_v3  ;;  %v225_v30 = vadd.s32 127, %v224_v4 }
  0xc3   :  { %v130_v32 = vsel %vm47_vm14, %v129_v28, %v128_v23  ;;  %v223_v35 = vor.u32 %v222_v25, %v221_v29  ;;  %v226_v36 = vshll.u32 %v225_v30, 23 }
  0xc4   :  { %v133_v34 = vsel %vm427_vm15, %v374_v7, %v130_v32 }
  0xc5   :  { %300 = vcosq.f32 %v133_v34  ;;  %v227_v38 = vor.u32 4788187, %v226_v36  ;;  %v230_v40 = vcvt.s32.f32 %v223_v35 }
  0xc6   :  { %302 = vsinq.f32 %v133_v34 }
  0xc7   :  { %v228_v37 = vand.u32 2147483647, %v227_v38 }
  0xc9   :  { %v231_v41 = vmul.f32 %v230_v40, %v228_v37 }
  0xcb   :  { %v232_v42 = vxor.u32 2147483648, %v231_v41 }
  0xcd   :  { %v233_v46 = vsel %vm150_vm0, %v232_v42, %v231_v41 }
  0xce   :  { %v236_v45 = vsel %vm439_vm1, %v378_v13, %v233_v46 }
  0xcf   :  { %v301_v48 = vpop.eup %300  ;;  %304 = vcosq.f32 %v236_v45 }
  0xd0   :  { %v303_v49 = vpop.eup %302  ;;  %v144_v50 = vxor.u32 2147483648, %v301_v48  ;;  %306 = vsinq.f32 %v236_v45 }
  0xd1   :  { %v141_v27 = vxor.u32 2147483648, %v303_v49 }
  0xd2   :  { %v145_v52 = vsel %vm143_vm2, %v144_v50, %v303_v49 }
  0xd3   :  { %v142_v20 = vsel %vm140_vm3, %v301_v48, %v141_v27 }
  0xd4   :  { %v146_v53 = vsel %vm139_vm4, %v142_v20, %v145_v52 }
  0xd5   :  { %v147_v54 = vsel %vm137_vm5, nan, %v146_v53 }
  0xd6   :  { %v251_v56 = vmul.f32 1.4142135, %v147_v54 }
  0xd8   :  { %253 = vst [vmem:[#allocation2] sm:$0xff] %v251_v56 }
  0xd9   :  { %v305_v58 = vpop.eup %304 }
  0xda   :  { %v307_v59 = vpop.eup %306  ;;  %v247_v60 = vxor.u32 2147483648, %v305_v58 }
  0xdb   :  { %v244_v62 = vxor.u32 2147483648, %v307_v59 }
  0xdc   :  { %v248_v61 = vsel %vm246_vm6, %v247_v60, %v307_v59 }
  0xdd   :  { %v245_v63 = vsel %vm243_vm7, %v305_v58, %v244_v62 }
  0xde   :  { %v249_v7 = vsel %vm242_vm8, %v245_v63, %v248_v61 }
  0xdf   :  { %v250_v0 = vsel %vm240_vm9, nan, %v249_v7 }
  0xe0   :  { %v252_v1 = vmul.f32 1.4142135, %v250_v0 }
  0xe2   :  { %254 = vst [vmem:[#allocation2 + $0x8] sm:$0xff] %v252_v1 }
  0xe3   :  { %319 = shalt.err (!%p316_p4)
}
  0xe4   :  { %s320_s22 = scalar_lea.hbm %s465_s3, 256 }
  0xe5   :  { %p321_p5 = scmp.ne.s32.totalorder %s465_s3, %s320_s22  ;;  %p324_p6 = scmp.lt.u32.totalorder %s320_s22, %s465_s3 }
  0xe7   :  { %p326_p7 = pnand %p324_p6, %p321_p5 }
  0xe9   :  { %329 = shalt.err (!%p326_p7)
}
  0xea   :  { %s340_s27 = smov 128   ;;  %s341_s28 = smov 8  }
  0xeb   :  { %266 = dma.vmem_to_hbm [thread:$0]  %s261_s1, 256, %s465_s3, [#allocation3], %s340_s27, %s340_s27, %s341_s28  }
  0xec   :  { %330 = dma.done.wait [#allocation3], 256  }
  0xed   :  { %331 = vsyncadd [#allocation3], 4294967040 }
  0xee   :  { %270 = vsyncpa [#allocation3], 1 }

</bundles_post_ra>
